<compile_context>
chip_gen: v6e
topology: v6e:2x2x1
jax: 0.10.0
libtpu: 0.0.40
codegen_flags: <defaults>
</compile_context>

<pallas_src>
import jax
import jax.numpy as jnp
from jax import lax
from jax.experimental import pallas as pl
from jax.experimental.pallas import tpu as pltpu


def _lm_head_kernel(x_ref, w_ref, b_ref, o_ref):
    # x_ref : (TM, E)   activation tile (compute dtype, e.g. bf16)
    # w_ref : (TV, E)   tied-embedding weight tile (compute dtype)
    # b_ref : (1, TV)   bias tile (f32)
    # o_ref : (TM, TV)  output tile (f32)
    #
    # A @ B.T with contraction on E for both operands; the MXU consumes this
    # form directly (no per-tile transpose of the [TV, E] weight is required).
    acc = lax.dot_general(
        x_ref[...],
        w_ref[...],
        dimension_numbers=(((1,), (1,)), ((), ())),
        preferred_element_type=jnp.float32,
    )
    o_ref[...] = (acc + b_ref[...]).astype(o_ref.dtype)


def _round_up(a, b):
    return ((a + b - 1) // b) * b


def _vmem_capacity_bytes():
    """Per-TensorCore VMEM capacity, with a conservative fallback."""
    try:
        return int(pltpu.get_tpu_info().vmem_capacity_bytes)
    except Exception:
        pass
    try:
        kind = jax.devices()[0].device_kind.lower()
    except Exception:
        kind = ""
    # v5e / v6e (Trillium) have 128 MiB VMEM per TensorCore; v7x has 64 MiB.
    if any(tag in kind for tag in ("v5 lite", "v5e", "v5litepod", "v6", "trillium")):
        return 128 << 20
    return 64 << 20  # conservative default (covers v7x and unknown parts)


def _vmem_needed(tm, tv, E, in_bytes, out_bytes):
    # Double-buffered activation / weight / bias input tiles + output tile.
    return 2 * (tm * E * in_bytes + tv * E * in_bytes + tv * 4 + tm * tv * out_bytes)


def lm_head_pallas(x2d, weight, bias, *, tile_m=None, tile_v=None,
                   compute_dtype=jnp.bfloat16, out_dtype=jnp.float32,
                   small_m_bytes=8 << 20):
    """Tied-embedding decoder: x2d [M, E] @ weight.T + bias -> [M, V].

    `weight` is the embedding table laid out [V, E]; it is used untransposed.
    For best end-to-end performance pass `weight` already cast to
    `compute_dtype` (cache the bf16 copy across calls) so the V*E cast is not
    re-done every forward.
    """
    M, E = x2d.shape
    V, E2 = weight.shape
    assert E == E2 and bias.shape == (V,)

    in_bytes = jnp.dtype(compute_dtype).itemsize
    out_bytes = jnp.dtype(out_dtype).itemsize

    vmem_cap = _vmem_capacity_bytes()
    # Per-generation default tiles (see module docstring).
    if tile_m is None or tile_v is None:
        if vmem_cap >= (100 << 20):
            tm_d, tv_d = 512, 1024        # v5e / v6e (128 MiB VMEM)
        else:
            tm_d, tv_d = 256, 512         # v7x (64 MiB VMEM)
        tile_m = tile_m if tile_m is not None else tm_d
        tile_v = tile_v if tile_v is not None else tv_d

    # Effective tiles for small problems. bf16 packs (16, 128) per vreg, so
    # keep the token (sublane) tile a multiple of 16 and the vocab (lane) tile
    # a multiple of 128. Ragged last blocks are masked by Pallas, so no
    # wrapper-side padding and no output slice copy are needed.
    tm = min(tile_m, _round_up(M, 16))
    tv = min(tile_v, _round_up(V, 128))

    # Stay inside the per-generation scoped-VMEM budget: shrink tiles rather
    # than just clamping the limit.
    budget = min(int(vmem_cap * 0.85), 100 << 20)
    while _vmem_needed(tm, tv, E, in_bytes, out_bytes) > budget:
        if tm > 128:
            tm //= 2
        elif tv > 256:
            tv //= 2
        else:
            break

    x = x2d if x2d.dtype == compute_dtype else x2d.astype(compute_dtype)
    # NOTE: this cast only runs when the caller did not pre-cast/cache the
    # compute-dtype weight (recommended for real models — it is a full V*E
    # HBM copy otherwise).
    w = weight if weight.dtype == compute_dtype else weight.astype(compute_dtype)
    b2 = bias.astype(jnp.float32).reshape(1, V)

    small_m = ((M * E * in_bytes) <= small_m_bytes
               and _vmem_needed(M, tv, E, in_bytes, out_bytes) <= budget)

    if small_m:
        # Fast path: whole activation matrix resident in VMEM; 1-D grid over
        # vocab tiles only, so x is DMA'd once and only weight tiles stream.
        grid = (pl.cdiv(V, tv),)
        in_specs = [
            pl.BlockSpec((M, E), lambda j: (0, 0)),       # activations (resident)
            pl.BlockSpec((tv, E), lambda j: (j, 0)),      # weight (untransposed)
            pl.BlockSpec((1, tv), lambda j: (0, j)),      # bias
        ]
        out_specs = pl.BlockSpec((M, tv), lambda j: (0, j))
        dim_sem = ("parallel",)
        vmem_needed = _vmem_needed(M, tv, E, in_bytes, out_bytes)
    else:
        # General path: vocab tiles on the outer grid axis so each weight tile
        # stays VMEM-resident across the inner token loop and is streamed from
        # HBM exactly once; only the small activation tiles are re-read.
        grid = (pl.cdiv(V, tv), pl.cdiv(M, tm))
        in_specs = [
            pl.BlockSpec((tm, E), lambda j, i: (i, 0)),   # activations
            pl.BlockSpec((tv, E), lambda j, i: (j, 0)),   # weight (untransposed)
            pl.BlockSpec((1, tv), lambda j, i: (0, j)),   # bias
        ]
        out_specs = pl.BlockSpec((tm, tv), lambda j, i: (i, j))
        dim_sem = ("parallel", "parallel")
        vmem_needed = _vmem_needed(tm, tv, E, in_bytes, out_bytes)

    vmem_limit = int(min(max(vmem_needed + (4 << 20), 32 << 20), budget))

    return pl.pallas_call(
        _lm_head_kernel,
        out_shape=jax.ShapeDtypeStruct((M, V), out_dtype),
        grid_spec=pl.GridSpec(
            grid=grid,
            in_specs=in_specs,
            out_specs=out_specs,
        ),
        compiler_params=pltpu.CompilerParams(
            dimension_semantics=dim_sem,
            vmem_limit_bytes=vmem_limit,
        ),
    )(x, w, b2)


def language_model_head_forward(inp, weight, bias, **kwargs):
    """Full forward matching the PyTorch module.

    inp: [B, S, E] -> output [B*(S-1), V] (float32 by default).
    """
    B, S, E = inp.shape
    # The drop-last-token slice + reshape stays as cheap JAX glue; it is
    # negligible vs the weight stream.
    x = inp[:, :-1, :].reshape(B * (S - 1), E)
    return lm_head_pallas(x, weight, bias, **kwargs)


if __name__ == "__main__":
    # Small, module-consistent shapes.
    B, S, E, V = 2, 8, 32, 512

    key = jax.random.PRNGKey(0)
    k_in, k_w, k_b = jax.random.split(key, 3)

    inp = jax.random.normal(k_in, (B, S, E), dtype=jnp.float32)
    # Tied embedding weight: [vocab, embed_dim].
    weight = jax.random.normal(k_w, (V, E), dtype=jnp.float32) * 0.02
    bias = jax.random.normal(k_b, (V,), dtype=jnp.float32) * 0.01

    # Pre-cast the tied-embedding weight once (the cached bf16 copy a real
    # model would hold), so the V*E cast is not paid per forward call.
    weight_bf16 = weight.astype(jnp.bfloat16)

    # Fast path: whole activation matrix resident in VMEM, 1-D vocab grid.
    out = language_model_head_forward(inp, weight_bf16, bias)
    out = jax.block_until_ready(out)

    # General tiled path (forced by disabling the small-M fast path) — also
    # exercises ragged last blocks since M = 14 is not a tile multiple.
    out_tiled = language_model_head_forward(inp, weight_bf16, bias, small_m_bytes=0)
    out_tiled = jax.block_until_ready(out_tiled)

    # Reference in plain JAX (same semantics as the PyTorch forward).
    x_ref = inp[:, :-1, :].reshape(B * (S - 1), E)
    ref = x_ref @ weight.T + bias
    assert out.shape == (B * (S - 1), V)
    assert out_tiled.shape == (B * (S - 1), V)
    # bf16 MXU inputs with f32 accumulation -> slightly wider tolerance than
    # pure f32. TODO(synk): offer an f32 compute path if exact parity with the
    # PyTorch f32 Linear is required.
    assert jnp.allclose(out, ref, atol=2e-2, rtol=2e-2), (
        float(jnp.max(jnp.abs(out - ref))))
    assert jnp.allclose(out_tiled, ref, atol=2e-2, rtol=2e-2), (
        float(jnp.max(jnp.abs(out_tiled - ref))))

    print("KERNEL_OK")
</pallas_src>

<mosaic_0001>
module attributes {stable_mosaic.version = 11 : i64} {
  func.func @_lm_head_kernel(%arg0: i32, %arg1: memref<14x32xbf16, #tpu.memory_space<vmem>>, %arg2: memref<512x32xbf16, #tpu.memory_space<vmem>>, %arg3: memref<1x512xf32, #tpu.memory_space<vmem>>, %arg4: memref<14x512xf32, #tpu.memory_space<vmem>>) attributes {dimension_semantics = [#tpu.dimension_semantics<parallel>], iteration_bounds = array<i64: 1>, scalar_prefetch = 0 : i64, scratch_operands = 0 : i64, tpu.core_type = #tpu.core_type<tc>, window_params = [{pipeline_mode = #tpu.pipeline_mode<synchronous>, transform_indices = @transform_0, window_bounds = array<i64: 14, 32>}, {transform_indices = @transform_1, window_bounds = array<i64: 512, 32>}, {transform_indices = @transform_2, window_bounds = array<i64: 1, 512>}, {transform_indices = @transform_3, window_bounds = array<i64: 14, 512>}]} {
    %c0 = arith.constant 0 : index
    %c0_0 = arith.constant 0 : index
    %0 = vector.load %arg1[%c0, %c0_0] : memref<14x32xbf16, #tpu.memory_space<vmem>>, vector<14x32xbf16>
    %c0_1 = arith.constant 0 : index
    %c0_2 = arith.constant 0 : index
    %1 = vector.load %arg2[%c0_1, %c0_2] : memref<512x32xbf16, #tpu.memory_space<vmem>>, vector<512x32xbf16>
    %cst = arith.constant dense<0.000000e+00> : vector<14x512xf32>
    %2 = tpu.matmul %0, %1, %cst {dimension_numbers = #tpu.dot_dimension_numbers<[1], [1], [0], [0], [0, 0, 1, 0], [], []>} : vector<14x32xbf16>, vector<512x32xbf16>, vector<14x512xf32> -> vector<14x512xf32>
    %c0_3 = arith.constant 0 : index
    %c0_4 = arith.constant 0 : index
    %3 = vector.load %arg3[%c0_3, %c0_4] : memref<1x512xf32, #tpu.memory_space<vmem>>, vector<1x512xf32>
    %4 = vector.broadcast %3 : vector<1x512xf32> to vector<14x512xf32>
    %5 = arith.addf %2, %4 : vector<14x512xf32>
    %c0_5 = arith.constant 0 : index
    %c0_6 = arith.constant 0 : index
    %6 = vector.load %arg4[%c0_5, %c0_6] : memref<14x512xf32, #tpu.memory_space<vmem>>, vector<14x512xf32>
    tpu.vector_store %arg4[%c0_5, %c0_6], %5 {strides = array<i32>} : memref<14x512xf32, #tpu.memory_space<vmem>>, vector<14x512xf32>,
    return
  }
  func.func @transform_0(%arg0: i32) -> (i32, i32) {
    %c0_i32 = arith.constant 0 : i32
    %c0_i32_0 = arith.constant 0 : i32
    %c0_i32_1 = arith.constant 0 : i32
    return %c0_i32, %c0_i32_0 : i32, i32
  }
  func.func @transform_1(%arg0: i32) -> (i32, i32) {
    %c0_i32 = arith.constant 0 : i32
    %c0_i32_0 = arith.constant 0 : i32
    return %arg0, %c0_i32 : i32, i32
  }
  func.func @transform_2(%arg0: i32) -> (i32, i32) {
    %c0_i32 = arith.constant 0 : i32
    %c0_i32_0 = arith.constant 0 : i32
    return %c0_i32, %arg0 : i32, i32
  }
  func.func @transform_3(%arg0: i32) -> (i32, i32) {
    %c0_i32 = arith.constant 0 : i32
    %c0_i32_0 = arith.constant 0 : i32
    return %c0_i32, %arg0 : i32, i32
  }
}

</mosaic_0001>

<bundles_post_ra>
// kernel: tpu_custom_call.1
= control target key start
LH: loop header
LB: loop body
LE: loop exit
PB: predicated region body
PF: predicated region fallthrough
CT: control target
= control target key end

     0   :  { %vm269_vm0 = vcmask 261120   ;;  %s788_s0 = inlined_call_operand.vmem [shape: bf16[14,32], index: 0, kind: input, shape index: {}]   ;;  %s789_s1 = inlined_call_operand.vmem [shape: bf16[512,32], index: 1, kind: input, shape index: {}]   ;;  %s790_s2 = inlined_call_operand.vmem [shape: f32[1,512], index: 2, kind: input, shape index: {}]   ;;  %s791_s3 = inlined_call_operand.hbm [shape: f32[14,512], index: 3, kind: output, shape index: {}]  }
   0x1   :  { %v569_v0 = vld [vmem:[%s789_s1 + $0x78] sm:$0xff]   ;;  %v573_v5 = vld [vmem:[%s789_s1 + $0x70] sm:$0xff]   ;;  %v577_v11 = vld [vmem:[%s789_s1 + $0x68] sm:$0xff]  }
   0x2   :  { %v570_v1 = vld [vmem:[%s789_s1 + $0xf8] sm:$0xff]   ;;  %550 = vmatprep.subr.msk.bf16.mxu0 %vm269_vm0, %v569_v0  ;;  %v574_v7 = vld [vmem:[%s789_s1 + $0xf0] sm:$0xff]   ;;  %v578_v13 = vld [vmem:[%s789_s1 + $0xe8] sm:$0xff]  }
   0x3   :  { %v571_v2 = vld [vmem:[%s789_s1 + $0x38] sm:$0xff]   ;;  %558 = vmatprep.subr.msk.bf16.mxu1 %vm269_vm0, %v570_v1  ;;  %v575_v8 = vld [vmem:[%s789_s1 + $0x30] sm:$0xff]   ;;  %v579_v14 = vld [vmem:[%s789_s1 + $0x28] sm:$0xff]  }
   0x4   :  { %v572_v3 = vld [vmem:[%s789_s1 + $0xb8] sm:$0xff]   ;;  %v295_v4 = vsel %vm269_vm0, %v571_v2, 0  ;;  %v576_v9 = vld [vmem:[%s789_s1 + $0xb0] sm:$0xff]   ;;  %v292_v10 = vsel %vm269_vm0, %v575_v8, 0  ;;  %v580_v15 = vld [vmem:[%s789_s1 + $0xa8] sm:$0xff]   ;;  %v289_v16 = vsel %vm269_vm0, %v579_v14, 0 }
   0x5   :  { %515 = vmatpush3.bf16.xpose.msra.mxu0 %v295_v4  ;;  %v343_v6 = vsel %vm269_vm0, %v572_v3, 0  ;;  %v340_v12 = vsel %vm269_vm0, %v576_v9, 0  ;;  %v581_v17 = vld [vmem:[%s789_s1 + $0x60] sm:$0xff]   ;;  %v337_v18 = vsel %vm269_vm0, %v580_v15, 0  ;;  %v585_v23 = vld [vmem:[%s789_s1 + $0x58] sm:$0xff]   ;;  %v589_v30 = vld [vmem:[%s789_s1 + $0x50] sm:$0xff]  }
   0x6   :  { %533 = vmatpush3.bf16.xpose.msra.mxu1 %v343_v6  ;;  %551 = vmatprep.subr.msk.bf16.mxu0 %vm269_vm0, %v573_v5  ;;  %v582_v19 = vld [vmem:[%s789_s1 + $0xe0] sm:$0xff]   ;;  %v586_v25 = vld [vmem:[%s789_s1 + $0xd8] sm:$0xff]  }
   0x7   :  { %559 = vmatprep.subr.msk.bf16.mxu1 %vm269_vm0, %v574_v7  ;;  %v583_v20 = vld [vmem:[%s789_s1 + $0x20] sm:$0xff]   ;;  %v587_v26 = vld [vmem:[%s789_s1 + $0x18] sm:$0xff]  }
   0x8   :  { %v584_v21 = vld [vmem:[%s789_s1 + $0xa0] sm:$0xff]   ;;  %v286_v22 = vsel %vm269_vm0, %v583_v20, 0  ;;  %v588_v27 = vld [vmem:[%s789_s1 + $0x98] sm:$0xff]   ;;  %v283_v29 = vsel %vm269_vm0, %v587_v26, 0 }
   0x9   :  { %v334_v24 = vsel %vm269_vm0, %v584_v21, 0  ;;  %v601_v28 = vld [vmem:[%s788_s0] sm:$0x7f]  }
   0xd   :  { %517 = vmatpush3.bf16.xpose.msra.mxu0 %v292_v10 }
   0xe   :  { %535 = vmatpush3.bf16.xpose.msra.mxu1 %v340_v12  ;;  %552 = vmatprep.subr.msk.bf16.mxu0 %vm269_vm0, %v577_v11 }
   0xf   :  { %560 = vmatprep.subr.msk.bf16.mxu1 %vm269_vm0, %v578_v13 }
  0x15   :  { %519 = vmatpush3.bf16.xpose.msra.mxu0 %v289_v16 }
  0x16   :  { %537 = vmatpush3.bf16.xpose.msra.mxu1 %v337_v18  ;;  %553 = vmatprep.subr.msk.bf16.mxu0 %vm269_vm0, %v581_v17 }
  0x17   :  { %561 = vmatprep.subr.msk.bf16.mxu1 %vm269_vm0, %v582_v19 }
  0x1d   :  { %521 = vmatpush3.bf16.xpose.msra.mxu0 %v286_v22 }
  0x1e   :  { %539 = vmatpush3.bf16.xpose.msra.mxu1 %v334_v24  ;;  %554 = vmatprep.subr.msk.bf16.mxu0 %vm269_vm0, %v585_v23 }
  0x1f   :  { %562 = vmatprep.subr.msk.bf16.mxu1 %vm269_vm0, %v586_v25 }
  0x20   :  { %8 = vsyncpa [#allocation3], 0  ;;  %v331_v31 = vsel %vm269_vm0, %v588_v27, 0  ;;  %v590_v32 = vld [vmem:[%s789_s1 + $0xd0] sm:$0xff]   ;;  %530 = vmatprep.mubr.msk.bf16.mxu0 %vm269_vm0, %v601_v28  ;;  %548 = vmatprep.mubr.msk.bf16.mxu1 %vm269_vm0, %v601_v28  ;;  %v593_v36 = vld [vmem:[%s789_s1 + $0x48] sm:$0xff]   ;;  %v84_v49 = vlaneseq }
  0x21   :  { %v591_v33 = vld [vmem:[%s789_s1 + $0x10] sm:$0xff]   ;;  %v594_v38 = vld [vmem:[%s789_s1 + $0xc8] sm:$0xff]   ;;  %v597_v42 = vld [vmem:[%s789_s1 + $0x40] sm:$0xff]  }
  0x22   :  { %v592_v34 = vld [vmem:[%s789_s1 + $0x90] sm:$0xff]   ;;  %v280_v35 = vsel %vm269_vm0, %v591_v33, 0  ;;  %v595_v39 = vld [vmem:[%s789_s1 + $0x8] sm:$0xff]   ;;  %v598_v44 = vld [vmem:[%s789_s1 + $0xc0] sm:$0xff]   ;;  %v85_v50 = vshrl.u32 %v84_v49, 7 }
  0x23   :  { %v328_v37 = vsel %vm269_vm0, %v592_v34, 0  ;;  %v596_v40 = vld [vmem:[%s789_s1 + $0x88] sm:$0xff]   ;;  %v277_v41 = vsel %vm269_vm0, %v595_v39, 0  ;;  %v599_v45 = vld [vmem:[%s789_s1] sm:$0xff]  }
  0x24   :  { %v325_v43 = vsel %vm269_vm0, %v596_v40, 0  ;;  %v600_v46 = vld [vmem:[%s789_s1 + $0x80] sm:$0xff]   ;;  %v274_v47 = vsel %vm269_vm0, %v599_v45, 0  ;;  %v86_v51 = vsub.s32 0, %v85_v50  ;;  %v94_v53 = vsub.s32 2, %v85_v50  ;;  %s624_s1 = smov [#allocation2]  }
  0x25   :  { %523 = vmatpush3.bf16.xpose.msra.mxu0 %v283_v29  ;;  %v322_v48 = vsel %vm269_vm0, %v600_v46, 0  ;;  %v82_v52 = vld [vmem:[%s790_s2] sm:$0xf]  ;;  %v90_v54 = vsub.s32 1, %v85_v50  ;;  %v98_v55 = vsub.s32 3, %v85_v50  ;;  %s468_s2 = sshll.u32 %s624_s1, 4  ;;  %s469_s2 = int_to_ptr.vmem [resolvable:$true] %s468_s2 }
  0x26   :  { %541 = vmatpush3.bf16.xpose.msra.mxu1 %v331_v31  ;;  %555 = vmatprep.subr.msk.bf16.mxu0 %vm269_vm0, %v589_v30  ;;  %v87_v56 = vrot.slane %v82_v52, %v86_v51  ;;  %v95_v57 = vrot.slane %v82_v52, %v94_v53  ;;  %s602_s25 = scalar_lea.vmem %s469_s2, 1024  ;;  %p607_p1 = scmp.lt.s32.totalorder %s469_s2, %s469_s2 }
  0x27   :  { %563 = vmatprep.subr.msk.bf16.mxu1 %vm269_vm0, %v590_v32  ;;  %v91_v58 = vrot.slane %v82_v52, %v90_v54  ;;  %v99_v60 = vrot.slane %v82_v52, %v98_v55  ;;  %p603_p0 = scmp.ne.s32.totalorder %s469_s2, %s602_s25  ;;  %p608_p2 = scmp.lt.s32.totalorder %s602_s25, %s602_s25 }
  0x29   :  { %p609_p3 = por %p608_p2, %p607_p1 }
  0x2b   :  { %p610_p4 = pnand %p609_p3, %p603_p0 }
  0x2d   :  { %525 = vmatpush3.bf16.xpose.msra.mxu0 %v280_v35 }
  0x2e   :  { %543 = vmatpush3.bf16.xpose.msra.mxu1 %v328_v37  ;;  %556 = vmatprep.subr.msk.bf16.mxu0 %vm269_vm0, %v593_v36 }
  0x2f   :  { %564 = vmatprep.subr.msk.bf16.mxu1 %vm269_vm0, %v594_v38 }
  0x35   :  { %527 = vmatpush3.bf16.xpose.msra.mxu0 %v277_v41 }
  0x36   :  { %545 = vmatpush3.bf16.xpose.msra.mxu1 %v325_v43  ;;  %557 = vmatprep.subr.msk.bf16.mxu0 %vm269_vm0, %v597_v42 }
  0x37   :  { %565 = vmatprep.subr.msk.bf16.mxu1 %vm269_vm0, %v598_v44 }
  0x3d   :  { %529 = vmatpush3.bf16.xpose.msra.mxu0 %v274_v47 }
  0x3e   :  { %547 = vmatpush3.bf16.xpose.msra.mxu1 %v322_v48 }
  0x44   :  { %531 = vmatmul.mubr.msk.bf16.vlgmr.msra.gmra.mxu0 %vm269_vm0, %v601_v28 }
  0x45   :  { %549 = vmatmul.mubr.msk.bf16.vlgmr.msra.gmra.mxu1 %vm269_vm0, %v601_v28 }
 0x104   :  { %v403_v59 = vpop.f32.mrf.mxu0 }
 0x105   :  { %v404_v61 = vadd.f32 %v403_v59, %v87_v56  ;;  %v446_v62 = vpop.f32.mrf.mxu1 }
 0x106   :  { %v447_v63 = vadd.f32 %v446_v62, %v95_v57  ;;  %v405_v0 = vpop.f32.mrf.mxu0 }
 0x107   :  { %455 = vst [vmem:[#allocation2] sm:$0xff] %v404_v61  ;;  %v406_v1 = vadd.f32 %v405_v0, %v91_v58  ;;  %v448_v2 = vpop.f32.mrf.mxu1 }
 0x108   :  { %457 = vst [vmem:[#allocation2 + $0x10] sm:$0xff] %v447_v63  ;;  %v449_v3 = vadd.f32 %v448_v2, %v99_v60  ;;  %v407_v4 = vpop.f32.mrf.mxu0 }
 0x109   :  { %456 = vst [vmem:[#allocation2 + $0x8] sm:$0xff] %v406_v1  ;;  %v408_v5 = vadd.f32 %v407_v4, %v87_v56  ;;  %v450_v6 = vpop.f32.mrf.mxu1 }
 0x10a   :  { %458 = vst [vmem:[#allocation2 + $0x18] sm:$0xff] %v449_v3  ;;  %v451_v7 = vadd.f32 %v450_v6, %v95_v57  ;;  %v409_v8 = vpop.f32.mrf.mxu0 }
 0x10b   :  { %459 = vst [vmem:[#allocation2 + $0x20] sm:$0x3f] %v408_v5  ;;  %v410_v9 = vadd.f32 %v409_v8, %v91_v58  ;;  %v452_v10 = vpop.f32.mrf.mxu1 }
 0x10c   :  { %461 = vst [vmem:[#allocation2 + $0x30] sm:$0x3f] %v451_v7  ;;  %v453_v11 = vadd.f32 %v452_v10, %v99_v60 }
 0x10d   :  { %460 = vst [vmem:[#allocation2 + $0x28] sm:$0x3f] %v410_v9 }
 0x10e   :  { %462 = vst [vmem:[#allocation2 + $0x38] sm:$0x3f] %v453_v11 }
 0x10f   :  { %613 = shalt.err (!%p610_p4)
}
 0x110   :  { %s625_s26 = smov 512   ;;  %s626_s27 = smov 32  }
 0x111   :  { %474 = dma.vmem_to_hbm [thread:$0]  %s469_s2, 1024, %s791_s3, [#allocation3], %s625_s26, %s625_s26, %s626_s27  }
 0x112   :  { %622 = dma.done.wait [#allocation3], 1024  }
 0x113   :  { %623 = vsyncadd [#allocation3], 4294966272 }
 0x114   :  { %478 = vsyncpa [#allocation3], 1 }

</bundles_post_ra>
